<compile_context>
chip_gen: v7x
topology: tpu7x:2x2x1
jax: 0.10.0
libtpu: 0.0.40
codegen_flags: <defaults>
</compile_context>

<pallas_src>
import functools

import jax
import jax.numpy as jnp
from jax.experimental import pallas as pl
from jax.experimental.pallas import tpu as pltpu


_HEADROOM_BYTES = 8 * 1024 * 1024        # slack under the scoped VMEM limit
_TARGET_BLOCK_BYTES = 4 * 1024 * 1024    # real HBM bytes per input block per step


def _vmem_limit_bytes():
    """Scoped VMEM limit: ~3/4 of physical per-core VMEM, capped, with fallback."""
    cap = 64 * 1024 * 1024               # conservative fallback: v7x per-TC VMEM
    try:
        info = pltpu.get_tpu_info()
        cap_q = int(getattr(info, "vmem_capacity_bytes", 0))
        if cap_q > 0:
            cap = cap_q
    except Exception:
        pass
    # 48 MiB on 64 MiB parts (v7x), 96 MiB on 128 MiB parts (v5e/v6e).
    return max(32 * 1024 * 1024, min((cap * 3) // 4, 96 * 1024 * 1024))


def _pick_tile_n(N, C, itemsize, input_budget):
    """Largest aligned row tile fitting the VMEM budget, targeting multi-MiB blocks."""
    c_pad = ((C + 127) // 128) * 128               # lane padding in VMEM
    align = {4: 8, 2: 16, 1: 32}.get(itemsize, 8)  # sublane packing per dtype
    # Per-row VMEM bytes: 2 inputs x 2 pipeline buffers (input dtype, lane padded)
    # + ~4 f32 tile-sized working values (upcast x/t, exp(x - m), t*x).
    bytes_per_row = c_pad * (2 * 2 * itemsize + 4 * 4)
    if align * bytes_per_row > input_budget:
        # TODO(synk): class-axis grid dim with online logsumexp for huge C.
        raise ValueError(
            f"num_classes={C} too large for a single-block class axis on this TPU")
    budget_rows = input_budget // bytes_per_row
    target_rows = max(1, _TARGET_BLOCK_BYTES // max(C * itemsize, 1))
    rows = max(align, min(budget_rows, target_rows))
    tile = max(align, (rows // align) * align)
    n_rounded = ((N + align - 1) // align) * align
    return min(tile, n_rounded)                    # no point tiling beyond N


def _soft_ce_kernel(x_ref, t_ref, out_ref, *, total_rows, tile_n, inner, needs_mask):
    """One (tile_n, C) tile: fused soft-target CE partial, accumulated into the
    partition's VMEM-resident (1, 8, 128) output block across the inner grid axis."""
    p = pl.program_id(0)
    j = pl.program_id(1)

    @pl.when(j == 0)
    def _():
        out_ref[...] = jnp.zeros_like(out_ref)

    xf = x_ref[...].astype(jnp.float32)            # (tile_n, C)
    tf = t_ref[...].astype(jnp.float32)            # (tile_n, C)

    # row_loss = sum(t) * (m + log(sum(exp(x - m)))) - sum(t * x)
    m = jnp.max(xf, axis=-1, keepdims=True)                                 # (tile_n, 1)
    lse = m + jnp.log(jnp.sum(jnp.exp(xf - m), axis=-1, keepdims=True))     # (tile_n, 1)
    t_sum = jnp.sum(tf, axis=-1, keepdims=True)                             # (tile_n, 1)
    tx_sum = jnp.sum(tf * xf, axis=-1, keepdims=True)                       # (tile_n, 1)
    row_loss = t_sum * lse - tx_sum                                         # (tile_n, 1)

    if needs_mask:
        # Zero padded rows of ragged / excess (clamped) tiles.  All reductions above
        # are row-local, so garbage rows cannot contaminate valid rows.
        tile_idx = p * inner + j
        row_ids = tile_idx * tile_n + jax.lax.broadcasted_iota(
            jnp.int32, (tile_n, 1), 0)
        row_loss = jnp.where(row_ids < total_rows, row_loss, jnp.float32(0.0))

    # Broadcast-add the tile partial into the lane-dense output block (every
    # element of the (1, 8, 128) block ends up holding the partition total).
    out_ref[...] = out_ref[...] + jnp.sum(row_loss)


def soft_target_cross_entropy(x, target, *, tile_n=None):
    """x, target: [..., C] (matching the PyTorch module). Returns scalar float32."""
    assert x.shape == target.shape and x.ndim >= 2
    C = x.shape[-1]
    x2 = x.reshape(-1, C)
    t2 = target.reshape(-1, C)
    N = x2.shape[0]
    itemsize = jnp.dtype(x2.dtype).itemsize

    vmem_limit = _vmem_limit_bytes()
    if tile_n is None:
        tile_n = _pick_tile_n(N, C, itemsize, vmem_limit - _HEADROOM_BYTES)

    total_tiles = -(-N // tile_n)
    num_parts = 2 if total_tiles >= 2 else 1       # megacore split (v7x); serial elsewhere
    inner = -(-total_tiles // num_parts)
    needs_mask = (N % tile_n != 0) or (num_parts * inner != total_tiles)

    if num_parts * inner == total_tiles:
        def in_map(p, j):
            return (p * inner + j, 0)
    else:
        # Excess grid steps re-read the last valid block; their rows are masked out.
        def in_map(p, j):
            return (jnp.minimum(p * inner + j, total_tiles - 1), 0)

    kernel = functools.partial(
        _soft_ce_kernel,
        total_rows=N, tile_n=tile_n, inner=inner, needs_mask=needs_mask,
    )

    partials = pl.pallas_call(
        kernel,
        out_shape=jax.ShapeDtypeStruct((num_parts, 8, 128), jnp.float32),
        grid_spec=pltpu.PrefetchScalarGridSpec(
            num_scalar_prefetch=0,
            grid=(num_parts, inner),
            in_specs=[
                pl.BlockSpec((tile_n, C), in_map),
                pl.BlockSpec((tile_n, C), in_map),
            ],
            out_specs=pl.BlockSpec((1, 8, 128), lambda p, j: (p, 0, 0)),
        ),
        compiler_params=pltpu.CompilerParams(
            dimension_semantics=("parallel", "arbitrary"),
            vmem_limit_bytes=vmem_limit,
        ),
    )(x2, t2)

    # Trivial JAX epilogue: combine the per-partition partial sums and take the mean.
    return jnp.sum(partials[:, 0, 0]) / jnp.float32(N)


def _reference(x, target):
    logp = jax.nn.log_softmax(x.astype(jnp.float32), axis=-1)
    return jnp.mean(jnp.sum(-target.astype(jnp.float32) * logp, axis=-1))


if __name__ == "__main__":
    key = jax.random.PRNGKey(0)
    k = jax.random.split(key, 6)

    # Case 1: small f32 inputs, single tile, no masking.
    N1, C1 = 16, 32
    x1 = jax.random.normal(k[0], (N1, C1), dtype=jnp.float32)
    t1 = jax.nn.softmax(jax.random.normal(k[1], (N1, C1), dtype=jnp.float32), axis=-1)
    loss1 = jax.block_until_ready(soft_target_cross_entropy(x1, t1))
    ref1 = _reference(x1, t1)
    assert jnp.allclose(loss1, ref1, rtol=1e-5, atol=1e-5), (loss1, ref1)

    # Case 2: ragged N with bf16 inputs (row mask + in-kernel f32 upcast).
    N2, C2 = 13, 32
    x2 = jax.random.normal(k[2], (N2, C2), dtype=jnp.float32).astype(jnp.bfloat16)
    t2 = jax.nn.softmax(
        jax.random.normal(k[3], (N2, C2), dtype=jnp.float32), axis=-1
    ).astype(jnp.bfloat16)
    loss2 = jax.block_until_ready(soft_target_cross_entropy(x2, t2))
    ref2 = _reference(x2, t2)
    assert jnp.allclose(loss2, ref2, rtol=1e-4, atol=1e-4), (loss2, ref2)

    # Case 3: forced small tile -> multi-tile, 2-partition grid with an excess
    # (clamped + fully masked) tile and a ragged last tile; exercises the general
    # megacore-split / accumulation path.
    N3, C3 = 300, 128
    x3 = jax.random.normal(k[4], (N3, C3), dtype=jnp.float32)
    t3 = jax.nn.softmax(jax.random.normal(k[5], (N3, C3), dtype=jnp.float32), axis=-1)
    loss3 = jax.block_until_ready(soft_target_cross_entropy(x3, t3, tile_n=64))
    ref3 = _reference(x3, t3)
    assert jnp.allclose(loss3, ref3, rtol=1e-5, atol=2e-5), (loss3, ref3)

    print("KERNEL_OK")
</pallas_src>

<mosaic_0001>
module attributes {stable_mosaic.version = 11 : i64} {
  func.func @_soft_ce_kernel(%arg0: i32, %arg1: i32, %arg2: memref<16x32xf32, #tpu.memory_space<vmem>>, %arg3: memref<16x32xf32, #tpu.memory_space<vmem>>, %arg4: memref<1x8x128xf32, #tpu.memory_space<vmem>>) attributes {dimension_semantics = [#tpu.dimension_semantics<parallel>, #tpu.dimension_semantics<arbitrary>], iteration_bounds = array<i64: 1, 1>, scalar_prefetch = 0 : i64, scratch_operands = 0 : i64, tpu.core_type = #tpu.core_type<tc>, window_params = [{transform_indices = @transform_0, window_bounds = array<i64: 16, 32>}, {transform_indices = @transform_1, window_bounds = array<i64: 16, 32>}, {transform_indices = @transform_2, window_bounds = array<i64: 1, 8, 128>}]} {
    %c0_i32 = arith.constant 0 : i32
    %0 = arith.cmpi eq, %arg1, %c0_i32 : i32
    %1 = arith.extui %0 : i1 to i32
    %c0_i32_0 = arith.constant 0 : i32
    %2 = arith.cmpi ne, %1, %c0_i32_0 : i32
    scf.if %2 {
      %cst_14 = arith.constant 0.000000e+00 : f32
      %29 = vector.broadcast %cst_14 : f32 to vector<1x8x128xf32>
      %c0_15 = arith.constant 0 : index
      %c0_16 = arith.constant 0 : index
      %c0_17 = arith.constant 0 : index
      %30 = vector.load %arg4[%c0_15, %c0_16, %c0_17] : memref<1x8x128xf32, #tpu.memory_space<vmem>>, vector<1x8x128xf32>
      tpu.vector_store %arg4[%c0_15, %c0_16, %c0_17], %29 {strides = array<i32>} : memref<1x8x128xf32, #tpu.memory_space<vmem>>, vector<1x8x128xf32>,
    } else {
    }
    %c0 = arith.constant 0 : index
    %c0_1 = arith.constant 0 : index
    %3 = vector.load %arg2[%c0, %c0_1] : memref<16x32xf32, #tpu.memory_space<vmem>>, vector<16x32xf32>
    %c0_2 = arith.constant 0 : index
    %c0_3 = arith.constant 0 : index
    %4 = vector.load %arg3[%c0_2, %c0_3] : memref<16x32xf32, #tpu.memory_space<vmem>>, vector<16x32xf32>
    %cst = arith.constant dense<0xFF800000> : vector<16xf32>
    %5 = vector.multi_reduction <maximumf>, %3, %cst [1] : vector<16x32xf32> to vector<16xf32>
    %6 = vector.shape_cast %5 : vector<16xf32> to vector<16x1xf32>
    %7 = vector.broadcast %6 : vector<16x1xf32> to vector<16x32xf32>
    %8 = arith.subf %3, %7 : vector<16x32xf32>
    %9 = math.exp %8 : vector<16x32xf32>
    %cst_4 = arith.constant dense<0.000000e+00> : vector<16xf32>
    %10 = vector.multi_reduction <add>, %9, %cst_4 [1] : vector<16x32xf32> to vector<16xf32>
    %11 = vector.shape_cast %10 : vector<16xf32> to vector<16x1xf32>
    %12 = math.log %11 : vector<16x1xf32>
    %13 = arith.addf %6, %12 : vector<16x1xf32>
    %cst_5 = arith.constant dense<0.000000e+00> : vector<16xf32>
    %14 = vector.multi_reduction <add>, %4, %cst_5 [1] : vector<16x32xf32> to vector<16xf32>
    %15 = vector.shape_cast %14 : vector<16xf32> to vector<16x1xf32>
    %16 = arith.mulf %4, %3 : vector<16x32xf32>
    %cst_6 = arith.constant dense<0.000000e+00> : vector<16xf32>
    %17 = vector.multi_reduction <add>, %16, %cst_6 [1] : vector<16x32xf32> to vector<16xf32>
    %18 = vector.shape_cast %17 : vector<16xf32> to vector<16x1xf32>
    %19 = arith.mulf %15, %13 : vector<16x1xf32>
    %20 = arith.subf %19, %18 : vector<16x1xf32>
    %c0_7 = arith.constant 0 : index
    %c0_8 = arith.constant 0 : index
    %c0_9 = arith.constant 0 : index
    %21 = vector.load %arg4[%c0_7, %c0_8, %c0_9] : memref<1x8x128xf32, #tpu.memory_space<vmem>>, vector<1x8x128xf32>
    %22 = vector.shape_cast %20 : vector<16x1xf32> to vector<1x16x1xf32>
    %cst_10 = arith.constant dense<0.000000e+00> : vector<1xf32>
    %23 = vector.multi_reduction <add>, %22, %cst_10 [1, 2] : vector<1x16x1xf32> to vector<1xf32>
    %24 = vector.shape_cast %23 : vector<1xf32> to vector<1x1x1xf32>
    %25 = vector.extract %24[0, 0, 0] : f32 from vector<1x1x1xf32>
    %26 = vector.broadcast %25 : f32 to vector<1x8x128xf32>
    %27 = arith.addf %21, %26 : vector<1x8x128xf32>
    %c0_11 = arith.constant 0 : index
    %c0_12 = arith.constant 0 : index
    %c0_13 = arith.constant 0 : index
    %28 = vector.load %arg4[%c0_11, %c0_12, %c0_13] : memref<1x8x128xf32, #tpu.memory_space<vmem>>, vector<1x8x128xf32>
    tpu.vector_store %arg4[%c0_11, %c0_12, %c0_13], %27 {strides = array<i32>} : memref<1x8x128xf32, #tpu.memory_space<vmem>>, vector<1x8x128xf32>,
    return
  }
  func.func @transform_0(%arg0: i32, %arg1: i32) -> (i32, i32) {
    %c1_i32 = arith.constant 1 : i32
    %0 = arith.muli %arg0, %c1_i32 : i32
    %1 = arith.addi %0, %arg1 : i32
    %c0_i32 = arith.constant 0 : i32
    %c0_i32_0 = arith.constant 0 : i32
    return %1, %c0_i32 : i32, i32
  }
  func.func @transform_1(%arg0: i32, %arg1: i32) -> (i32, i32) {
    %c1_i32 = arith.constant 1 : i32
    %0 = arith.muli %arg0, %c1_i32 : i32
    %1 = arith.addi %0, %arg1 : i32
    %c0_i32 = arith.constant 0 : i32
    %c0_i32_0 = arith.constant 0 : i32
    return %1, %c0_i32 : i32, i32
  }
  func.func @transform_2(%arg0: i32, %arg1: i32) -> (i32, i32, i32) {
    %c0_i32 = arith.constant 0 : i32
    %c0_i32_0 = arith.constant 0 : i32
    %c0_i32_1 = arith.constant 0 : i32
    return %arg0, %c0_i32, %c0_i32_0 : i32, i32, i32
  }
}

</mosaic_0001>

<bundles_post_ra>
// kernel: tpu_custom_call.1
= control target key start
LH: loop header
LB: loop body
LE: loop exit
PB: predicated region body
PF: predicated region fallthrough
CT: control target
= control target key end

     0   :  { %7 = vsyncpa [#allocation3], 0  ;;  %s289_s0 = inlined_call_operand.hbm [shape: f32[16,32], index: 0, kind: input, shape index: {}]   ;;  %s290_s1 = inlined_call_operand.hbm [shape: f32[16,32], index: 1, kind: input, shape index: {}]   ;;  %s291_s2 = inlined_call_operand.hbm [shape: f32[1,8,128], index: 2, kind: output, shape index: {}]  }
   0x1   :  { %8 = vsyncpa [#allocation6], 0 }
   0x2   :  { %9 = vsyncpa [#allocation4], 0  ;;  %s225_s9 = smov [#allocation2]   ;;  %s153_s13 = scalar_lea.hbm %s289_s0, 256 }
   0x3   :  { %s19_s10 = sshll.u32 %s225_s9, 4  ;;  %p154_p0 = scmp.ne.s32.totalorder %s289_s0, %s153_s13  ;;  %s20_s10 = int_to_ptr.vmem [resolvable:$true] %s19_s10 }
   0x4   :  { %p157_p1 = scmp.lt.u32.totalorder %s153_s13, %s289_s0 }
   0x6   :  { %p159_p2 = pnand %p157_p1, %p154_p0 }
   0x8   :  { %162 = shalt.err (!%p159_p2)
}
   0x9   :  { %s163_s18 = scalar_lea.vmem %s20_s10, 256  ;;  %p168_p4 = scmp.lt.s32.totalorder %s20_s10, %s20_s10 }
   0xa   :  { %p164_p3 = scmp.ne.s32.totalorder %s20_s10, %s163_s18  ;;  %p169_p5 = scmp.lt.s32.totalorder %s163_s18, %s163_s18 }
   0xc   :  { %p170_p6 = por %p169_p5, %p168_p4 }
   0xe   :  { %p171_p7 = pnand %p170_p6, %p164_p3 }
  0x10   :  { %174 = shalt.err (!%p171_p7)
}
  0x11   :  { %s226_s19 = smov 128   ;;  %s227_s20 = smov 8  }
  0x12   :  { %25 = dma.hbm_to_vmem [thread:$0]  %s289_s0, 256, %s20_s10, [#allocation3], %s226_s19, %s226_s19, %s227_s20  }
  0x13   :  { %s228_s23 = smov [#allocation5]   ;;  %s175_s27 = scalar_lea.hbm %s290_s1, 256 }
  0x14   :  { %s35_s24 = sshll.u32 %s228_s23, 4  ;;  %p176_p8 = scmp.ne.s32.totalorder %s290_s1, %s175_s27  ;;  %s36_s24 = int_to_ptr.vmem [resolvable:$true] %s35_s24 }
  0x15   :  { %p179_p9 = scmp.lt.u32.totalorder %s175_s27, %s290_s1 }
  0x17   :  { %p181_p10 = pnand %p179_p9, %p176_p8 }
  0x19   :  { %184 = shalt.err (!%p181_p10)
}
  0x1a   :  { %s185_s4 = scalar_lea.vmem %s36_s24, 256  ;;  %p190_p12 = scmp.lt.s32.totalorder %s36_s24, %s36_s24 }
  0x1b   :  { %p186_p11 = scmp.ne.s32.totalorder %s36_s24, %s185_s4  ;;  %p191_p13 = scmp.lt.s32.totalorder %s185_s4, %s185_s4 }
  0x1d   :  { %p192_p0 = por %p191_p13, %p190_p12 }
  0x1f   :  { %p193_p1 = pnand %p192_p0, %p186_p11 }
  0x21   :  { %196 = shalt.err (!%p193_p1)
}
  0x22   :  { %41 = dma.hbm_to_vmem [thread:$0]  %s290_s1, 256, %s36_s24, [#allocation6], %s226_s19, %s226_s19, %s227_s20  }
  0x23   :  { %219 = dma.done.wait [#allocation3], 256  }
  0x24   :  { %220 = vsyncadd [#allocation3], 4294967040 }
  0x25   :  { %221 = dma.done.wait [#allocation6], 256  }
  0x26   :  { %222 = vsyncadd [#allocation6], 4294967040  ;;  %vm61_vm0 = vcmask 261120   ;;  %v57_v0 = vld [vmem:[#allocation2] sm:$0xff]  ;;  %v58_v1 = vld [vmem:[#allocation2 + $0x8] sm:$0xff]  ;;  %vm105_vm1 = vcmask 7168  }
  0x27   :  { %v62_v2 = vsel %vm61_vm0, %v57_v0, -inf  ;;  %v65_v3 = vsel %vm61_vm0, %v58_v1, -inf  ;;  %v59_v4 = vld [vmem:[#allocation5] sm:$0xff]  ;;  %v60_v17 = vld [vmem:[#allocation5 + $0x8] sm:$0xff]  ;;  %s229_s1 = smov [#allocation7]  }
  0x28   :  { %63 = vmax.xlane.f32.xlu0 %v62_v2  ;;  %v86_v5 = vsel %vm61_vm0, %v59_v4, 0.0  ;;  %v92_v6 = vmul.f32 %v59_v4, %v57_v0  ;;  %v89_v19 = vsel %vm61_vm0, %v60_v17, 0.0  ;;  %v93_v20 = vmul.f32 %v60_v17, %v58_v1  ;;  %s127_s6 = sshll.u32 %s229_s1, 4  ;;  %s128_s6 = int_to_ptr.vmem [resolvable:$true] %s127_s6 }
  0x29   :  { %s197_s8 = scalar_lea.vmem %s128_s6, 128  ;;  %p202_p3 = scmp.lt.s32.totalorder %s128_s6, %s128_s6 }
  0x2a   :  { %v94_v7 = vsel %vm61_vm0, %v92_v6, 0.0  ;;  %v97_v21 = vsel %vm61_vm0, %v93_v20, 0.0  ;;  %p198_p2 = scmp.ne.s32.totalorder %s128_s6, %s197_s8  ;;  %p203_p4 = scmp.lt.s32.totalorder %s197_s8, %s197_s8 }
  0x2c   :  { %66 = vmax.xlane.f32.xlu0 %v65_v3  ;;  %p204_p5 = por %p203_p4, %p202_p3 }
  0x2e   :  { %p205_p6 = pnand %p204_p5, %p198_p2 }
  0x30   :  { %87 = vadd.xlane.f32.xlu0 %v86_v5 }
  0x34   :  { %95 = vadd.xlane.f32.xlu0 %v94_v7 }
  0xb5   :  { %v64_v8 = vpop.xlane.xlu0 %63 }
  0xb6   :  { %v68_v9 = vsub.f32 %v57_v0, %v64_v8 }
  0xb8   :  { %v70_v10 = vmul.f32 1.442695, %v68_v9 }
  0xb9   :  { %v67_v11 = vpop.xlane.xlu0 %66 }
  0xba   :  { %145 = vpow2.f32 %v70_v10  ;;  %v69_v12 = vsub.f32 %v58_v1, %v67_v11 }
  0xbc   :  { %v72_v13 = vmul.f32 1.442695, %v69_v12 }
  0xbd   :  { %v88_v25 = vpop.xlane.xlu0 %87 }
  0xbe   :  { %147 = vpow2.f32 %v72_v13 }
  0xc1   :  { %v96_v32 = vpop.xlane.xlu0 %95 }
  0xc4   :  { %v146_v14 = vpop.eup %145 }
  0xc5   :  { %v74_v15 = vsel %vm61_vm0, %v146_v14, 0.0 }
  0xc6   :  { %75 = vadd.xlane.f32.xlu1 %v74_v15 }
  0xc8   :  { %v148_v16 = vpop.eup %147 }
  0xc9   :  { %v77_v18 = vsel %vm61_vm0, %v148_v16, 0.0 }
  0xca   :  { %78 = vadd.xlane.f32.xlu1 %v77_v18 }
  0xce   :  { %90 = vadd.xlane.f32.xlu1 %v89_v19 }
  0xd2   :  { %98 = vadd.xlane.f32.xlu1 %v97_v21 }
 0x153   :  { %v76_v22 = vpop.xlane.xlu1 %75 }
 0x154   :  { %149 = vlog2.f32 %v76_v22 }
 0x157   :  { %v79_v23 = vpop.xlane.xlu1 %78 }
 0x158   :  { %151 = vlog2.f32 %v79_v23 }
 0x15b   :  { %v91_v27 = vpop.xlane.xlu1 %90 }
 0x15e   :  { %v150_v24 = vpop.eup %149 }
 0x15f   :  { %v81_v26 = vmul.f32 0.6931472, %v150_v24  ;;  %v99_v34 = vpop.xlane.xlu1 %98 }
 0x161   :  { %v84_v28 = vadd.f32 %v81_v26, %v64_v8 }
 0x162   :  { %v152_v29 = vpop.eup %151 }
 0x163   :  { %v83_v30 = vmul.f32 0.6931472, %v152_v29  ;;  %v100_v31 = vmul.f32 %v88_v25, %v84_v28 }
 0x165   :  { %v85_v33 = vadd.f32 %v83_v30, %v67_v11  ;;  %v102_v36 = vsub.f32 %v100_v31, %v96_v32 }
 0x167   :  { %v101_v35 = vmul.f32 %v91_v27, %v85_v33  ;;  %v106_v38 = vsel %vm105_vm1, %v102_v36, 0.0 }
 0x169   :  { %v103_v37 = vsub.f32 %v101_v35, %v99_v34 }
 0x16b   :  { %v107_v39 = vsel %vm105_vm1, %v103_v37, 0.0 }
 0x16c   :  { %v108_v40 = vadd.f32 %v107_v39, %v106_v38 }
 0x16e   :  { %109 = vadd.xlane.f32.xlu0 %v108_v40 }
 0x1fb   :  { %v110_v41 = vpop.xlane.xlu0 %109 }
 0x1fc   :  { %v111_v42 = vrot.slane %v110_v41, 4 }
 0x1fe   :  { %v112_v43 = vadd.f32 %v111_v42, %v110_v41 }
 0x200   :  { %v113_v44 = vrot.slane %v112_v43, 2 }
 0x202   :  { %v114_v45 = vadd.f32 %v113_v44, %v112_v43 }
 0x204   :  { %v115_v46 = vrot.slane %v114_v45, 1 }
 0x206   :  { %v116_v47 = vadd.f32 %v115_v46, %v114_v45 }
 0x208   :  { %137 = vpush %v116_v47 }
 0x239   :  { %s138_s7 = spop %137 }
 0x23a   :  { %v118_v48 = vstv %s138_s7 }
 0x23b   :  { %120 = vst [vmem:[#allocation7] sm:$0xff] %v118_v48 }
 0x23c   :  { %208 = shalt.err (!%p205_p6)
}
 0x23d   :  { %s209_s11 = scalar_lea.hbm %s291_s2, 128 }
 0x23e   :  { %p210_p7 = scmp.ne.s32.totalorder %s291_s2, %s209_s11  ;;  %p213_p8 = scmp.lt.u32.totalorder %s209_s11, %s291_s2 }
 0x240   :  { %p215_p9 = pnand %p213_p8, %p210_p7 }
 0x242   :  { %218 = shalt.err (!%p215_p9)
}
 0x243   :  { %130 = dma.vmem_to_hbm [thread:$0]  %s128_s6, 128, %s291_s2, [#allocation4]  }
 0x244   :  { %223 = dma.done.wait [#allocation4], 128  }
 0x245   :  { %224 = vsyncadd [#allocation4], 4294967168 }
 0x246   :  { %134 = vsyncpa [#allocation3], 1 }
 0x247   :  { %135 = vsyncpa [#allocation6], 1 }
 0x248   :  { %136 = vsyncpa [#allocation4], 1 }

</bundles_post_ra>
